<compile_context>
chip_gen: v5e
topology: v5e:2x2
jax: 0.10.0
libtpu: 0.0.40
codegen_flags: <defaults>
</compile_context>

<pallas_src>
import math

import jax
import jax.numpy as jnp
from jax.experimental import pallas as pl
from jax.experimental.pallas import tpu as pltpu

LN_EPS = 1e-5
SUBLANE = 8


def _gelu_tanh(x):
    # tanh-approx GELU: tanh lowers to the EUP (its own VLIW slot), cutting the
    # erf VALU polynomial down to ~8 VALU ops + 1 EUP op per element.
    c = math.sqrt(2.0 / math.pi)
    return 0.5 * x * (1.0 + jnp.tanh(c * (x + 0.044715 * (x * x * x))))


def _gelu_exact(x):
    # PyTorch nn.GELU() default (exact erf) -- used only by the reference.
    return 0.5 * x * (1.0 + jax.lax.erf(x * (1.0 / math.sqrt(2.0))))


def _mlp_kernel(x_ref, ln_g_ref, ln_b_ref,
                w1_ref, b1_ref, w2_ref, b2_ref, w3_ref, b3_ref,
                o_ref):
    """Fused LayerNorm + 3-layer MLP (GELU between hidden layers) on one row tile."""
    x = x_ref[...].astype(jnp.float32)

    # Single-pass LayerNorm statistics: var = E[x^2] - mean^2 (biased variance,
    # matching PyTorch).  One fewer 512-wide VALU pass than the two-pass form.
    mean = jnp.mean(x, axis=-1, keepdims=True)
    meansq = jnp.mean(x * x, axis=-1, keepdims=True)
    var = jnp.maximum(meansq - mean * mean, 0.0)
    xhat = (x - mean) * jax.lax.rsqrt(var + LN_EPS)
    xhat = xhat * ln_g_ref[...] + ln_b_ref[...]

    # Linear0 + GELU   (bf16 MXU inputs, f32 accumulation)
    h = jnp.dot(xhat.astype(jnp.bfloat16), w1_ref[...],
                preferred_element_type=jnp.float32) + b1_ref[...]
    h = _gelu_tanh(h)

    # Linear1 + GELU
    h = jnp.dot(h.astype(jnp.bfloat16), w2_ref[...],
                preferred_element_type=jnp.float32) + b2_ref[...]
    h = _gelu_tanh(h)

    # Linear2 (output head, no activation).  Output block is (tb, 48): last
    # dim equals the full array dim, so no lane padding / wrapper slicing.
    out = jnp.dot(h.astype(jnp.bfloat16), w3_ref[...],
                  preferred_element_type=jnp.float32) + b3_ref[...]
    o_ref[...] = out.astype(o_ref.dtype)


def _pick_row_tile(batch, block_rows, min_steps=2):
    """Row-tile: multiple of 8, <= block_rows, and (when possible) >= min_steps
    grid steps so the 'parallel' batch axis can shard across both TCs on v7x."""
    if batch <= SUBLANE:
        return batch                       # block dim == full array dim (legal)
    per_step = -(-batch // min_steps)      # cdiv
    per_step = ((per_step + SUBLANE - 1) // SUBLANE) * SUBLANE
    return max(SUBLANE, min(block_rows, per_step))


def linear_model_forward(x, params, *, block_rows=2048, out_dtype=None):
    """x: (B, 512) f32 or bf16.  params: dict of weights (see init_params)."""
    B, D_in = x.shape
    ln_g, ln_b = params["ln_g"], params["ln_b"]
    w1, b1 = params["w1"], params["b1"]
    w2, b2 = params["w2"], params["b2"]
    w3, b3 = params["w3"], params["b3"]
    h1, h2, d_out = w1.shape[1], w2.shape[1], w3.shape[1]
    out_dtype = x.dtype if out_dtype is None else out_dtype

    # No batch padding / output slicing: Pallas handles non-divisible grids
    # (out-of-bounds rows of the last block are masked on writeback; reading
    # garbage rows is safe because every op here is per-row).
    tb = _pick_row_tile(B, block_rows)
    grid = (pl.cdiv(B, tb),)

    # Constant index_map => these stay VMEM-resident across grid steps
    # (Mosaic skips the re-fetch when the block index does not change).
    const = lambda arr: pl.BlockSpec(arr.shape, lambda i: (0, 0))

    flops = 2 * B * (D_in * h1 + h1 * h2 + h2 * d_out)
    transcendentals = B * (h1 + h2)
    bytes_accessed = (x.size * x.dtype.itemsize
                      + B * d_out * jnp.dtype(out_dtype).itemsize
                      + sum(int(a.size) * a.dtype.itemsize
                            for a in (ln_g, ln_b, w1, b1, w2, b2, w3, b3)))

    out = pl.pallas_call(
        _mlp_kernel,
        out_shape=jax.ShapeDtypeStruct((B, d_out), out_dtype),
        grid=grid,
        in_specs=[
            pl.BlockSpec((tb, D_in), lambda i: (i, 0)),   # streamed x tiles
            const(ln_g), const(ln_b),                     # VMEM-resident params
            const(w1), const(b1),
            const(w2), const(b2),
            const(w3), const(b3),
        ],
        out_specs=pl.BlockSpec((tb, d_out), lambda i: (i, 0)),
        compiler_params=pltpu.CompilerParams(
            dimension_semantics=("parallel",),
            vmem_limit_bytes=64 * 1024 * 1024),
        cost_estimate=pl.CostEstimate(
            flops=flops,
            transcendentals=transcendentals,
            bytes_accessed=bytes_accessed),
    )(x, ln_g, ln_b, w1, b1, w2, b2, w3, b3)

    return out


def init_params(key, dims):
    """Deterministic init matching PyTorch defaults.

    LayerNorm: gamma=1, beta=0.
    nn.Linear: weight, bias ~ U(-1/sqrt(fan_in), 1/sqrt(fan_in)).
    Weights stored as (in, out) in bf16 (MXU-native); biases / LN params in f32.
    """
    params = {}
    params["ln_g"] = jnp.ones((1, dims[0]), jnp.float32)
    params["ln_b"] = jnp.zeros((1, dims[0]), jnp.float32)
    for i in range(len(dims) - 1):
        key, kw, kb = jax.random.split(key, 3)
        fan_in, fan_out = dims[i], dims[i + 1]
        bound = 1.0 / math.sqrt(fan_in)
        w = jax.random.uniform(kw, (fan_in, fan_out), jnp.float32, -bound, bound)
        params[f"w{i+1}"] = w.astype(jnp.bfloat16)
        params[f"b{i+1}"] = jax.random.uniform(
            kb, (1, fan_out), jnp.float32, -bound, bound)
    return params


def reference_forward(x, params, *, approximate_gelu=True):
    """Pure-JAX reference: same bf16-matmul / f32-accumulate recipe.

    approximate_gelu=False gives PyTorch's exact-erf GELU semantics.
    """
    gelu = _gelu_tanh if approximate_gelu else _gelu_exact
    xf = x.astype(jnp.float32)
    mean = jnp.mean(xf, axis=-1, keepdims=True)
    var = jnp.mean((xf - mean) ** 2, axis=-1, keepdims=True)
    h = (xf - mean) * jax.lax.rsqrt(var + LN_EPS)
    h = h * params["ln_g"] + params["ln_b"]
    h = jnp.dot(h.astype(jnp.bfloat16), params["w1"],
                preferred_element_type=jnp.float32) + params["b1"]
    h = gelu(h)
    h = jnp.dot(h.astype(jnp.bfloat16), params["w2"],
                preferred_element_type=jnp.float32) + params["b2"]
    h = gelu(h)
    h = jnp.dot(h.astype(jnp.bfloat16), params["w3"],
                preferred_element_type=jnp.float32) + params["b3"]
    return h.astype(x.dtype)


if __name__ == "__main__":
    # Linear(layers=[128, 64], output_dim=48, base_model='resnet18') ->
    # dims = [512, 128, 64, 48]
    dims = [512, 128, 64, 48]

    key = jax.random.PRNGKey(0)
    key, kx1, kx2 = jax.random.split(key, 3)
    params = init_params(key, dims)

    # Small demo batch (single block whose row dim equals the array dim).
    x_small = jax.random.normal(kx1, (2, dims[0]), jnp.float32)
    out_small = jax.block_until_ready(linear_model_forward(x_small, params))
    ref_small = reference_forward(x_small, params)
    assert out_small.shape == (2, dims[-1]), out_small.shape
    assert jnp.allclose(out_small, ref_small, atol=5e-3, rtol=5e-3), float(
        jnp.max(jnp.abs(out_small - ref_small)))

    # Multi-tile, non-divisible batch (272 = 2*128 + 16): exercises grid
    # pipelining and the masked writeback of the partial last block.
    x_big = jax.random.normal(kx2, (272, dims[0]), jnp.float32)
    out_big = jax.block_until_ready(
        linear_model_forward(x_big, params, block_rows=128))
    ref_big = reference_forward(x_big, params)
    assert out_big.shape == (272, dims[-1]), out_big.shape
    assert jnp.allclose(out_big, ref_big, atol=5e-3, rtol=5e-3), float(
        jnp.max(jnp.abs(out_big - ref_big)))

    # Sanity check vs PyTorch's exact-erf GELU semantics (tanh-approx GELU
    # deviates by ~1e-3 abs per activation).
    ref_exact = reference_forward(x_big, params, approximate_gelu=False)
    assert jnp.allclose(out_big, ref_exact, atol=3e-2, rtol=3e-2), float(
        jnp.max(jnp.abs(out_big - ref_exact)))

    # bf16 input stream (as if the upstream feature extractor emits bf16):
    # halves the dominant x HBM traffic; output follows the input dtype.
    x_bf16 = x_big.astype(jnp.bfloat16)
    out_bf16 = jax.block_until_ready(
        linear_model_forward(x_bf16, params, block_rows=128))
    ref_bf16 = reference_forward(x_bf16, params)
    assert out_bf16.shape == (272, dims[-1]), out_bf16.shape
    assert out_bf16.dtype == jnp.bfloat16, out_bf16.dtype
    assert jnp.allclose(out_bf16.astype(jnp.float32),
                        ref_bf16.astype(jnp.float32),
                        atol=3e-2, rtol=3e-2)

    print("KERNEL_OK")
</pallas_src>

<mosaic_0001>
module attributes {stable_mosaic.version = 11 : i64} {
  func.func @_mlp_kernel(%arg0: i32, %arg1: memref<2x512xf32, #tpu.memory_space<vmem>>, %arg2: memref<1x512xf32, #tpu.memory_space<vmem>>, %arg3: memref<1x512xf32, #tpu.memory_space<vmem>>, %arg4: memref<512x128xbf16, #tpu.memory_space<vmem>>, %arg5: memref<1x128xf32, #tpu.memory_space<vmem>>, %arg6: memref<128x64xbf16, #tpu.memory_space<vmem>>, %arg7: memref<1x64xf32, #tpu.memory_space<vmem>>, %arg8: memref<64x48xbf16, #tpu.memory_space<vmem>>, %arg9: memref<1x48xf32, #tpu.memory_space<vmem>>, %arg10: memref<2x48xf32, #tpu.memory_space<vmem>>) attributes {dimension_semantics = [#tpu.dimension_semantics<parallel>], iteration_bounds = array<i64: 1>, scalar_prefetch = 0 : i64, scratch_operands = 0 : i64, tpu.core_type = #tpu.core_type<tc>, window_params = [{transform_indices = @transform_0, window_bounds = array<i64: 2, 512>}, {pipeline_mode = #tpu.pipeline_mode<synchronous>, transform_indices = @transform_1, window_bounds = array<i64: 1, 512>}, {pipeline_mode = #tpu.pipeline_mode<synchronous>, transform_indices = @transform_2, window_bounds = array<i64: 1, 512>}, {pipeline_mode = #tpu.pipeline_mode<synchronous>, transform_indices = @transform_3, window_bounds = array<i64: 512, 128>}, {pipeline_mode = #tpu.pipeline_mode<synchronous>, transform_indices = @transform_4, window_bounds = array<i64: 1, 128>}, {pipeline_mode = #tpu.pipeline_mode<synchronous>, transform_indices = @transform_5, window_bounds = array<i64: 128, 64>}, {pipeline_mode = #tpu.pipeline_mode<synchronous>, transform_indices = @transform_6, window_bounds = array<i64: 1, 64>}, {pipeline_mode = #tpu.pipeline_mode<synchronous>, transform_indices = @transform_7, window_bounds = array<i64: 64, 48>}, {pipeline_mode = #tpu.pipeline_mode<synchronous>, transform_indices = @transform_8, window_bounds = array<i64: 1, 48>}, {transform_indices = @transform_9, window_bounds = array<i64: 2, 48>}]} {
    %c0 = arith.constant 0 : index
    %c0_0 = arith.constant 0 : index
    %0 = vector.load %arg1[%c0, %c0_0] : memref<2x512xf32, #tpu.memory_space<vmem>>, vector<2x512xf32>
    %cst = arith.constant dense<0.000000e+00> : vector<2xf32>
    %1 = vector.multi_reduction <add>, %0, %cst [1] : vector<2x512xf32> to vector<2xf32>
    %2 = vector.shape_cast %1 : vector<2xf32> to vector<2x1xf32>
    %cst_1 = arith.constant 5.120000e+02 : f32
    %3 = vector.broadcast %cst_1 : f32 to vector<2x1xf32>
    %4 = arith.divf %2, %3 : vector<2x1xf32>
    %5 = arith.mulf %0, %0 : vector<2x512xf32>
    %cst_2 = arith.constant dense<0.000000e+00> : vector<2xf32>
    %6 = vector.multi_reduction <add>, %5, %cst_2 [1] : vector<2x512xf32> to vector<2xf32>
    %7 = vector.shape_cast %6 : vector<2xf32> to vector<2x1xf32>
    %cst_3 = arith.constant 5.120000e+02 : f32
    %8 = vector.broadcast %cst_3 : f32 to vector<2x1xf32>
    %9 = arith.divf %7, %8 : vector<2x1xf32>
    %10 = arith.mulf %4, %4 : vector<2x1xf32>
    %11 = arith.subf %9, %10 : vector<2x1xf32>
    %cst_4 = arith.constant 0.000000e+00 : f32
    %12 = vector.broadcast %cst_4 : f32 to vector<2x1xf32>
    %13 = arith.maximumf %11, %12 : vector<2x1xf32>
    %14 = vector.broadcast %4 : vector<2x1xf32> to vector<2x512xf32>
    %15 = arith.subf %0, %14 : vector<2x512xf32>
    %cst_5 = arith.constant 9.99999974E-6 : f32
    %16 = vector.broadcast %cst_5 : f32 to vector<2x1xf32>
    %17 = arith.addf %13, %16 : vector<2x1xf32>
    %18 = math.rsqrt %17 : vector<2x1xf32>
    %19 = vector.broadcast %18 : vector<2x1xf32> to vector<2x512xf32>
    %20 = arith.mulf %15, %19 : vector<2x512xf32>
    %c0_6 = arith.constant 0 : index
    %c0_7 = arith.constant 0 : index
    %21 = vector.load %arg2[%c0_6, %c0_7] : memref<1x512xf32, #tpu.memory_space<vmem>>, vector<1x512xf32>
    %22 = vector.broadcast %21 : vector<1x512xf32> to vector<2x512xf32>
    %23 = arith.mulf %20, %22 : vector<2x512xf32>
    %c0_8 = arith.constant 0 : index
    %c0_9 = arith.constant 0 : index
    %24 = vector.load %arg3[%c0_8, %c0_9] : memref<1x512xf32, #tpu.memory_space<vmem>>, vector<1x512xf32>
    %25 = vector.broadcast %24 : vector<1x512xf32> to vector<2x512xf32>
    %26 = arith.addf %23, %25 : vector<2x512xf32>
    %27 = arith.truncf %26 : vector<2x512xf32> to vector<2x512xbf16>
    %c0_10 = arith.constant 0 : index
    %c0_11 = arith.constant 0 : index
    %28 = vector.load %arg4[%c0_10, %c0_11] : memref<512x128xbf16, #tpu.memory_space<vmem>>, vector<512x128xbf16>
    %cst_12 = arith.constant dense<0.000000e+00> : vector<2x128xf32>
    %29 = tpu.matmul %27, %28, %cst_12 {dimension_numbers = #tpu.dot_dimension_numbers<[1], [0], [0], [1], [0, 0, 1, 1], [], []>} : vector<2x512xbf16>, vector<512x128xbf16>, vector<2x128xf32> -> vector<2x128xf32>
    %c0_13 = arith.constant 0 : index
    %c0_14 = arith.constant 0 : index
    %30 = vector.load %arg5[%c0_13, %c0_14] : memref<1x128xf32, #tpu.memory_space<vmem>>, vector<1x128xf32>
    %31 = vector.broadcast %30 : vector<1x128xf32> to vector<2x128xf32>
    %32 = arith.addf %29, %31 : vector<2x128xf32>
    %cst_15 = arith.constant 5.000000e-01 : f32
    %33 = vector.broadcast %cst_15 : f32 to vector<2x128xf32>
    %34 = arith.mulf %33, %32 : vector<2x128xf32>
    %35 = arith.mulf %32, %32 : vector<2x128xf32>
    %36 = arith.mulf %35, %32 : vector<2x128xf32>
    %cst_16 = arith.constant 4.471500e-02 : f32
    %37 = vector.broadcast %cst_16 : f32 to vector<2x128xf32>
    %38 = arith.mulf %37, %36 : vector<2x128xf32>
    %39 = arith.addf %32, %38 : vector<2x128xf32>
    %cst_17 = arith.constant 0.797884583 : f32
    %40 = vector.broadcast %cst_17 : f32 to vector<2x128xf32>
    %41 = arith.mulf %40, %39 : vector<2x128xf32>
    %42 = math.tanh %41 : vector<2x128xf32>
    %cst_18 = arith.constant 1.000000e+00 : f32
    %43 = vector.broadcast %cst_18 : f32 to vector<2x128xf32>
    %44 = arith.addf %43, %42 : vector<2x128xf32>
    %45 = arith.mulf %34, %44 : vector<2x128xf32>
    %46 = arith.truncf %45 : vector<2x128xf32> to vector<2x128xbf16>
    %c0_19 = arith.constant 0 : index
    %c0_20 = arith.constant 0 : index
    %47 = vector.load %arg6[%c0_19, %c0_20] : memref<128x64xbf16, #tpu.memory_space<vmem>>, vector<128x64xbf16>
    %cst_21 = arith.constant dense<0.000000e+00> : vector<2x64xf32>
    %48 = tpu.matmul %46, %47, %cst_21 {dimension_numbers = #tpu.dot_dimension_numbers<[1], [0], [0], [1], [0, 0, 1, 1], [], []>} : vector<2x128xbf16>, vector<128x64xbf16>, vector<2x64xf32> -> vector<2x64xf32>
    %c0_22 = arith.constant 0 : index
    %c0_23 = arith.constant 0 : index
    %49 = vector.load %arg7[%c0_22, %c0_23] : memref<1x64xf32, #tpu.memory_space<vmem>>, vector<1x64xf32>
    %50 = vector.broadcast %49 : vector<1x64xf32> to vector<2x64xf32>
    %51 = arith.addf %48, %50 : vector<2x64xf32>
    %cst_24 = arith.constant 5.000000e-01 : f32
    %52 = vector.broadcast %cst_24 : f32 to vector<2x64xf32>
    %53 = arith.mulf %52, %51 : vector<2x64xf32>
    %54 = arith.mulf %51, %51 : vector<2x64xf32>
    %55 = arith.mulf %54, %51 : vector<2x64xf32>
    %cst_25 = arith.constant 4.471500e-02 : f32
    %56 = vector.broadcast %cst_25 : f32 to vector<2x64xf32>
    %57 = arith.mulf %56, %55 : vector<2x64xf32>
    %58 = arith.addf %51, %57 : vector<2x64xf32>
    %cst_26 = arith.constant 0.797884583 : f32
    %59 = vector.broadcast %cst_26 : f32 to vector<2x64xf32>
    %60 = arith.mulf %59, %58 : vector<2x64xf32>
    %61 = math.tanh %60 : vector<2x64xf32>
    %cst_27 = arith.constant 1.000000e+00 : f32
    %62 = vector.broadcast %cst_27 : f32 to vector<2x64xf32>
    %63 = arith.addf %62, %61 : vector<2x64xf32>
    %64 = arith.mulf %53, %63 : vector<2x64xf32>
    %65 = arith.truncf %64 : vector<2x64xf32> to vector<2x64xbf16>
    %c0_28 = arith.constant 0 : index
    %c0_29 = arith.constant 0 : index
    %66 = vector.load %arg8[%c0_28, %c0_29] : memref<64x48xbf16, #tpu.memory_space<vmem>>, vector<64x48xbf16>
    %cst_30 = arith.constant dense<0.000000e+00> : vector<2x48xf32>
    %67 = tpu.matmul %65, %66, %cst_30 {dimension_numbers = #tpu.dot_dimension_numbers<[1], [0], [0], [1], [0, 0, 1, 1], [], []>} : vector<2x64xbf16>, vector<64x48xbf16>, vector<2x48xf32> -> vector<2x48xf32>
    %c0_31 = arith.constant 0 : index
    %c0_32 = arith.constant 0 : index
    %68 = vector.load %arg9[%c0_31, %c0_32] : memref<1x48xf32, #tpu.memory_space<vmem>>, vector<1x48xf32>
    %69 = vector.broadcast %68 : vector<1x48xf32> to vector<2x48xf32>
    %70 = arith.addf %67, %69 : vector<2x48xf32>
    %c0_33 = arith.constant 0 : index
    %c0_34 = arith.constant 0 : index
    %71 = vector.load %arg10[%c0_33, %c0_34] : memref<2x48xf32, #tpu.memory_space<vmem>>, vector<2x48xf32>
    tpu.vector_store %arg10[%c0_33, %c0_34], %70 {strides = array<i32>} : memref<2x48xf32, #tpu.memory_space<vmem>>, vector<2x48xf32>,
    return
  }
  func.func @transform_0(%arg0: i32) -> (i32, i32) {
    %c0_i32 = arith.constant 0 : i32
    %c0_i32_0 = arith.constant 0 : i32
    return %arg0, %c0_i32 : i32, i32
  }
  func.func @transform_1(%arg0: i32) -> (i32, i32) {
    %c0_i32 = arith.constant 0 : i32
    %c0_i32_0 = arith.constant 0 : i32
    %c0_i32_1 = arith.constant 0 : i32
    return %c0_i32, %c0_i32_0 : i32, i32
  }
  func.func @transform_2(%arg0: i32) -> (i32, i32) {
    %c0_i32 = arith.constant 0 : i32
    %c0_i32_0 = arith.constant 0 : i32
    %c0_i32_1 = arith.constant 0 : i32
    return %c0_i32, %c0_i32_0 : i32, i32
  }
  func.func @transform_3(%arg0: i32) -> (i32, i32) {
    %c0_i32 = arith.constant 0 : i32
    %c0_i32_0 = arith.constant 0 : i32
    %c0_i32_1 = arith.constant 0 : i32
    return %c0_i32, %c0_i32_0 : i32, i32
  }
  func.func @transform_4(%arg0: i32) -> (i32, i32) {
    %c0_i32 = arith.constant 0 : i32
    %c0_i32_0 = arith.constant 0 : i32
    %c0_i32_1 = arith.constant 0 : i32
    return %c0_i32, %c0_i32_0 : i32, i32
  }
  func.func @transform_5(%arg0: i32) -> (i32, i32) {
    %c0_i32 = arith.constant 0 : i32
    %c0_i32_0 = arith.constant 0 : i32
    %c0_i32_1 = arith.constant 0 : i32
    return %c0_i32, %c0_i32_0 : i32, i32
  }
  func.func @transform_6(%arg0: i32) -> (i32, i32) {
    %c0_i32 = arith.constant 0 : i32
    %c0_i32_0 = arith.constant 0 : i32
    %c0_i32_1 = arith.constant 0 : i32
    return %c0_i32, %c0_i32_0 : i32, i32
  }
  func.func @transform_7(%arg0: i32) -> (i32, i32) {
    %c0_i32 = arith.constant 0 : i32
    %c0_i32_0 = arith.constant 0 : i32
    %c0_i32_1 = arith.constant 0 : i32
    return %c0_i32, %c0_i32_0 : i32, i32
  }
  func.func @transform_8(%arg0: i32) -> (i32, i32) {
    %c0_i32 = arith.constant 0 : i32
    %c0_i32_0 = arith.constant 0 : i32
    %c0_i32_1 = arith.constant 0 : i32
    return %c0_i32, %c0_i32_0 : i32, i32
  }
  func.func @transform_9(%arg0: i32) -> (i32, i32) {
    %c0_i32 = arith.constant 0 : i32
    %c0_i32_0 = arith.constant 0 : i32
    return %arg0, %c0_i32 : i32, i32
  }
}

</mosaic_0001>

<bundles_post_ra>
// kernel: tpu_custom_call.1
= control target key start
LH: loop header
LB: loop body
LE: loop exit
PB: predicated region body
PF: predicated region fallthrough
CT: control target
= control target key end

     0   :  { %14 = vsyncpa [#allocation3], 0  ;;  %s1081_s0 = inlined_call_operand.vmem [shape: f32[2,512], index: 0, kind: input, shape index: {}]   ;;  %s1082_s1 = inlined_call_operand.vmem [shape: f32[1,512], index: 1, kind: input, shape index: {}]   ;;  %s1083_s2 = inlined_call_operand.vmem [shape: f32[1,512], index: 2, kind: input, shape index: {}]   ;;  %s1084_s3 = inlined_call_operand.hbm [shape: bf16[512,128], index: 3, kind: input, shape index: {}]   ;;  %s1085_s4 = inlined_call_operand.vmem [shape: f32[1,128], index: 4, kind: input, shape index: {}]   ;;  %s1086_s5 = inlined_call_operand.vmem [shape: bf16[128,64], index: 5, kind: input, shape index: {}]   ;;  %s1087_s6 = inlined_call_operand.vmem [shape: f32[1,64], index: 6, kind: input, shape index: {}]   ;;  %s1088_s7 = inlined_call_operand.vmem [shape: bf16[64,48], index: 7, kind: input, shape index: {}]   ;;  %s1089_s8 = inlined_call_operand.vmem [shape: f32[1,48], index: 8, kind: input, shape index: {}]   ;;  %s1090_s9 = inlined_call_operand.hbm [shape: f32[2,48], index: 9, kind: output, shape index: {}]  }
   0x1   :  { %15 = vsyncpa [#allocation4], 0  ;;  %s26_s11 = sshll.u32 %s1084_s3, 4  ;;  %s947_s12 = smov [#allocation2]   ;;  %s27_s11 = int_to_ptr.hbm [resolvable:$true] %s26_s11 }
   0x2   :  { %s28_s13 = sshll.u32 %s947_s12, 4  ;;  %s948_s14 = smov 64   ;;  %s29_s13 = int_to_ptr.vmem [resolvable:$true] %s28_s13 }
   0x3   :  { %s949_s15 = smov 4  }
   0x4   :  { %34 = dma.hbm_to_vmem [thread:$0]  %s27_s11, 4096, %s29_s13, [#allocation3], %s948_s14, %s948_s14, %s949_s15  }
   0x5   :  { %943 = dma.done.wait [#allocation3], 4096  }
   0x6   :  { %944 = vsyncadd [#allocation3], 4294963200  ;;  %v1009_v0 = vld [vmem:[%s1081_s0] sm:$0xff]  ;;  %vm61_vm0 = vcmask 1041408   ;;  %v950_v24 = vmov 512.0   ;;  %v840_v32 = vld [vmem:[#allocation2 + $0x30] sm:$0xff] }
   0x7   :  { %52 = vst [vmem:[#allocation1] ss:$4 sm:$0xff] %v1009_v0  ;;  %v79_v1 = vmul.f32 %v1009_v0, %v1009_v0  ;;  %887 = vrcp.f32 %v950_v24  ;;  %v841_v27 = vld [vmem:[#allocation2 + $0x38] sm:$0xff]  ;;  %v848_v33 = vld [vmem:[#allocation2 + $0x70] sm:$0xff]  ;;  %v839_v37 = vld [vmem:[#allocation2 + $0x28] sm:$0xff]  ;;  %vm138_vm2 = vcmask 1045508  }
   0x8   :  { %v849_v28 = vld [vmem:[#allocation2 + $0x78] sm:$0xff]  ;;  %432 = vmatpush.bf16.msra.mxu0 %v841_v27  ;;  %v856_v34 = vld [vmem:[#allocation2 + $0xb0] sm:$0xff]  ;;  %v847_v38 = vld [vmem:[#allocation2 + $0x68] sm:$0xff]  ;;  %vm140_vm5 = vcmask 1043456   ;;  %vm621_vm7 = vcmask 523264   ;;  %s647_s23 = sshll.u32 %s1090_s9, 4  ;;  %s648_s23 = int_to_ptr.hbm [resolvable:$true] %s647_s23 }
   0x9   :  { %v857_v29 = vld [vmem:[#allocation2 + $0xb8] sm:$0xff]  ;;  %445 = vmatpush.bf16.msra.mxu1 %v849_v28  ;;  %v864_v35 = vld [vmem:[#allocation2 + $0xf0] sm:$0xff]  ;;  %v855_v39 = vld [vmem:[#allocation2 + $0xa8] sm:$0xff]  ;;  %vm638_vm8 = vcmask 386048  }
   0xa   :  { %v865_v30 = vld [vmem:[#allocation2 + $0xf8] sm:$0xff]  ;;  %458 = vmatpush.bf16.msra.mxu2 %v857_v29  ;;  %v863_v40 = vld [vmem:[#allocation2 + $0xe8] sm:$0xff]  ;;  %v838_v43 = vld [vmem:[#allocation2 + $0x20] sm:$0xff] }
   0xb   :  { %471 = vmatpush.bf16.msra.mxu3 %v865_v30  ;;  %v846_v44 = vld [vmem:[#allocation2 + $0x60] sm:$0xff]  ;;  %v837_v48 = vld [vmem:[#allocation2 + $0x18] sm:$0xff]  ;;  %v836_v54 = vld [vmem:[#allocation2 + $0x10] sm:$0xff] }
   0xc   :  { %433 = vmatpush.bf16.msra.mxu0 %v840_v32  ;;  %v854_v45 = vld [vmem:[#allocation2 + $0xa0] sm:$0xff]  ;;  %v845_v49 = vld [vmem:[#allocation2 + $0x58] sm:$0xff]  ;;  %v844_v55 = vld [vmem:[#allocation2 + $0x50] sm:$0xff] }
   0xd   :  { %v888_v25 = vpop.eup %887  ;;  %446 = vmatpush.bf16.msra.mxu1 %v848_v33  ;;  %v862_v46 = vld [vmem:[#allocation2 + $0xe0] sm:$0xff]  ;;  %v853_v50 = vld [vmem:[#allocation2 + $0x98] sm:$0xff]  ;;  %v852_v56 = vld [vmem:[#allocation2 + $0x90] sm:$0xff] }
   0xe   :  { %v53_v2 = vld.sshfl [vmem:[#allocation1] sm:$0xff pattern:$0x73625140]  ;;  %v54_v3 = vld.sshfl [vmem:[#allocation1 + $0x8] sm:$0xff pattern:$0x73625140]  ;;  %459 = vmatpush.bf16.msra.mxu2 %v856_v34  ;;  %vm76_vm1 = vweird.f32 %v888_v25 }
   0xf   :  { %v55_v4 = vld.sshfl [vmem:[#allocation1 + $0x10] sm:$0xff pattern:$0x73625140]  ;;  %v56_v5 = vld.sshfl [vmem:[#allocation1 + $0x18] sm:$0xff pattern:$0x73625140]  ;;  %472 = vmatpush.bf16.msra.mxu3 %v864_v35 }
  0x10   :  { %v62_v6 = vsel %vm61_vm0, %v53_v2, 0.0  ;;  %v63_v7 = vsel %vm61_vm0, %v54_v3, 0.0  ;;  %v65_v8 = vsel %vm61_vm0, %v55_v4, 0.0  ;;  %81 = vst [vmem:[#allocation1] ss:$4 sm:$0xff] %v79_v1  ;;  %v67_v10 = vsel %vm61_vm0, %v56_v5, 0.0  ;;  %434 = vmatpush.bf16.msra.mxu0 %v839_v37 }
  0x11   :  { %v64_v9 = vadd.f32 %v63_v7, %v62_v6  ;;  %v72_v26 = vmul.f32 512.0, %v888_v25  ;;  %447 = vmatpush.bf16.msra.mxu1 %v847_v38  ;;  %v861_v52 = vld [vmem:[#allocation2 + $0xd8] sm:$0xff]  ;;  %v860_v59 = vld [vmem:[#allocation2 + $0xd0] sm:$0xff]  ;;  %v835_v61 = vld [vmem:[#allocation2 + $0x8] sm:$0xff] }
  0x12   :  { %460 = vmatpush.bf16.msra.mxu2 %v855_v39  ;;  %v843_v62 = vld [vmem:[#allocation2 + $0x48] sm:$0xff]  ;;  %v834_v3 = vld [vmem:[#allocation2] sm:$0xff] }
  0x13   :  { %v66_v11 = vadd.f32 %v65_v8, %v64_v9  ;;  %v73_v31 = vsub.f32 1.0, %v72_v26  ;;  %473 = vmatpush.bf16.msra.mxu3 %v863_v40  ;;  %v851_v63 = vld [vmem:[#allocation2 + $0x88] sm:$0xff]  ;;  %v842_v4 = vld [vmem:[#allocation2 + $0x40] sm:$0xff]  ;;  %v128_v8 = vld [vmem:[%s1082_s1] sm:$0xf] }
  0x14   :  { %435 = vmatpush.bf16.msra.mxu0 %v838_v43  ;;  %v859_v1 = vld [vmem:[#allocation2 + $0xc8] sm:$0xff]  ;;  %v850_v6 = vld [vmem:[#allocation2 + $0x80] sm:$0xff] }
  0x15   :  { %v68_v12 = vadd.f32 %v67_v10, %v66_v11  ;;  %v74_v36 = vmul.f32 %v888_v25, %v73_v31  ;;  %448 = vmatpush.bf16.msra.mxu1 %v846_v44  ;;  %v858_v7 = vld [vmem:[#allocation2 + $0xc0] sm:$0xff]  ;;  %v951_v10 = vmov 269488144  }
  0x16   :  { %461 = vmatpush.bf16.msra.mxu2 %v854_v45  ;;  %v105_v11 = vunpack.c.l.s4 %v951_v10 }
  0x17   :  { %69 = vadd.xlane.f32.xlu0 %v68_v12  ;;  %v82_v13 = vld.sshfl [vmem:[#allocation1] sm:$0xff pattern:$0x73625140]  ;;  %v83_v14 = vld.sshfl [vmem:[#allocation1 + $0x8] sm:$0xff pattern:$0x73625140]  ;;  %v75_v41 = vadd.f32 %v888_v25, %v74_v36  ;;  %474 = vmatpush.bf16.msra.mxu3 %v862_v46 }
  0x18   :  { %v84_v15 = vld.sshfl [vmem:[#allocation1 + $0x10] sm:$0xff pattern:$0x73625140]  ;;  %v85_v16 = vld.sshfl [vmem:[#allocation1 + $0x18] sm:$0xff pattern:$0x73625140]  ;;  %436 = vmatpush.bf16.msra.mxu0 %v837_v48 }
  0x19   :  { %v90_v17 = vsel %vm61_vm0, %v82_v13, 0.0  ;;  %v91_v18 = vsel %vm61_vm0, %v83_v14, 0.0  ;;  %v93_v19 = vsel %vm61_vm0, %v84_v15, 0.0  ;;  %v95_v21 = vsel %vm61_vm0, %v85_v16, 0.0  ;;  %449 = vmatpush.bf16.msra.mxu1 %v845_v49  ;;  %v144_v12 = vld [vmem:[%s1083_s2] sm:$0xf] }
  0x1a   :  { %v92_v20 = vadd.f32 %v91_v18, %v90_v17  ;;  %v77_v47 = vsel %vm76_vm1, %v888_v25, %v75_v41  ;;  %462 = vmatpush.bf16.msra.mxu2 %v853_v50  ;;  %v131_v14 = vperm.slane %v128_v8, 1  ;;  %v132_v15 = vperm.slane %v128_v8, 2 }
  0x1b   :  { %475 = vmatpush.bf16.msra.mxu3 %v861_v52  ;;  %v133_v16 = vperm.slane %v128_v8, 3  ;;  %v106_v18 = vunpack.c.0.s8 %v105_v11  ;;  %v146_v27 = vperm.slane %v144_v12, 0 }
  0x1c   :  { %v94_v22 = vadd.f32 %v93_v19, %v92_v20  ;;  %437 = vmatpush.bf16.msra.mxu0 %v836_v54  ;;  %v147_v19 = vperm.slane %v144_v12, 1  ;;  %v148_v20 = vperm.slane %v144_v12, 2  ;;  %v134_v24 = vrot.slane %v131_v14, 6  ;;  %v872_v54 = vld [vmem:[%s1086_s5 + $0x30] sm:$0xff] }
  0x1d   :  { %450 = vmatpush.bf16.msra.mxu1 %v844_v55  ;;  %v135_v25 = vrot.slane %v132_v15, 4  ;;  %v136_v26 = vrot.slane %v133_v16, 2  ;;  %v871_v55 = vld [vmem:[%s1086_s5 + $0x28] sm:$0xff] }
  0x1e   :  { %v96_v23 = vadd.f32 %v95_v21, %v94_v22  ;;  %463 = vmatpush.bf16.msra.mxu2 %v852_v56  ;;  %v149_v21 = vperm.slane %v144_v12, 3  ;;  %v150_v30 = vrot.slane %v147_v19, 6  ;;  %v151_v31 = vrot.slane %v148_v20, 4  ;;  %v870_v56 = vld [vmem:[%s1086_s5 + $0x20] sm:$0xff] }
  0x1f   :  { %476 = vmatpush.bf16.msra.mxu3 %v860_v59  ;;  %v139_v35 = vsel %vm138_vm2, %v135_v25, %v136_v26  ;;  %v867_v59 = vld [vmem:[%s1086_s5 + $0x8] sm:$0xff]  ;;  %v885_v25 = vld [vmem:[%s1087_s6] ss:$0 sm:$0xff]  ;;  %s952_s6 = smov [#allocation5]  }
  0x20   :  { %97 = vadd.xlane.f32.xlu0 %v96_v23  ;;  %438 = vmatpush.bf16.msra.mxu0 %v835_v61  ;;  %v130_v23 = vperm.slane %v128_v8, 0  ;;  %v152_v32 = vrot.slane %v149_v21, 2  ;;  %v153_v38 = vsel %vm61_vm0, %v146_v27, %v150_v30  ;;  %v884_v61 = vld [vmem:[%s1085_s4] ss:$0 sm:$0xff]  ;;  %v877_v21 = vld [vmem:[%s1088_s7 + $0x18] sm:$0xff]  ;;  %s645_s20 = sshll.u32 %s952_s6, 4  ;;  %s646_s20 = int_to_ptr.vmem [resolvable:$true] %s645_s20 }
  0x21   :  { %451 = vmatpush.bf16.msra.mxu1 %v843_v62 }
  0x22   :  { %464 = vmatpush.bf16.msra.mxu2 %v851_v63  ;;  %v137_v34 = vsel %vm61_vm0, %v130_v23, %v134_v24  ;;  %v154_v39 = vsel %vm138_vm2, %v151_v31, %v152_v32  ;;  %v875_v23 = vld [vmem:[%s1088_s7 + $0x8] sm:$0xff]  ;;  %v874_v24 = vld [vmem:[%s1088_s7] sm:$0xff] }
  0x23   :  { %477 = vmatpush.bf16.msra.mxu3 %v859_v1  ;;  %v141_v41 = vsel %vm140_vm5, %v137_v34, %v139_v35  ;;  %v155_v43 = vsel %vm140_vm5, %v153_v38, %v154_v39  ;;  %v886_v39 = vld [vmem:[%s1089_s8] ss:$0 sm:$0xff] }
  0x24   :  { %439 = vmatpush.bf16.msra.mxu0 %v834_v3 }
  0x25   :  { %452 = vmatpush.bf16.msra.mxu1 %v842_v4 }
  0x26   :  { %465 = vmatpush.bf16.msra.mxu2 %v850_v6 }
  0x27   :  { %478 = vmatpush.bf16.msra.mxu3 %v858_v7 }
  0x29   :  { %629 = vmatpush.bf16.msrb.mxu1 %v877_v21 }
  0x8a   :  { %v70_v42 = vpop.xlane.xlu0 %69 }
  0x8b   :  { %v78_v51 = vmul.f32 %v77_v47, %v70_v42 }
  0x8d   :  { %v100_v57 = vmul.f32 %v78_v51, %v78_v51  ;;  %v107_v29 = vperm.slane %v78_v51, %v106_v18 }
  0x8f   :  { %v109_v37 = vsub.f32 %v1009_v0, %v107_v29  ;;  %v873_v0 = vld [vmem:[%s1086_s5 + $0x38] sm:$0xff] }
  0x90   :  { %562 = vmatpush.bf16.msrb.mxu0 %v873_v0 }
  0x93   :  { %v98_v53 = vpop.xlane.xlu0 %97 }
  0x94   :  { %v99_v58 = vmul.f32 %v98_v53, %v77_v47  ;;  %563 = vmatpush.bf16.msrb.mxu0 %v872_v54 }
  0x96   :  { %v101_v60 = vsub.f32 %v99_v58, %v100_v57  ;;  %v869_v57 = vld [vmem:[%s1086_s5 + $0x18] sm:$0xff]  ;;  %v868_v58 = vld [vmem:[%s1086_s5 + $0x10] sm:$0xff] }
  0x98   :  { %v102_v2 = vmax.f32 %v101_v60, 0.0  ;;  %564 = vmatpush.bf16.msrb.mxu0 %v871_v55  ;;  %v866_v60 = vld [vmem:[%s1086_s5] sm:$0xff] }
  0x9a   :  { %v110_v5 = vadd.f32 1e-05, %v102_v2 }
  0x9c   :  { %889 = vrsqrt.f32 %v110_v5  ;;  %vm117_vm4 = vweird.f32 %v110_v5  ;;  %565 = vmatpush.bf16.msrb.mxu0 %v870_v56 }
  0xa0   :  { %566 = vmatpush.bf16.msrb.mxu0 %v869_v57 }
  0xa2   :  { %v890_v9 = vpop.eup %889 }
  0xa3   :  { %v112_v13 = vmul.f32 %v890_v9, %v110_v5  ;;  %vm118_vm3 = vweird.f32 %v890_v9 }
  0xa4   :  { %vm119_vm6 = vmor %vm117_vm4, %vm118_vm3  ;;  %567 = vmatpush.bf16.msrb.mxu0 %v868_v58 }
  0xa5   :  { %v113_v17 = vmul.f32 %v890_v9, %v112_v13 }
  0xa7   :  { %v114_v22 = vmul.f32 0.5, %v113_v17 }
  0xa8   :  { %568 = vmatpush.bf16.msrb.mxu0 %v867_v59 }
  0xa9   :  { %v115_v28 = vsub.f32 1.5, %v114_v22  ;;  %v876_v22 = vld [vmem:[%s1088_s7 + $0x10] sm:$0xff] }
  0xaa   :  { %630 = vmatpush.bf16.msrb.mxu1 %v876_v22 }
  0xab   :  { %v116_v33 = vmul.f32 %v890_v9, %v115_v28 }
  0xac   :  { %569 = vmatpush.bf16.msrb.mxu0 %v866_v60 }
  0xad   :  { %v120_v36 = vsel %vm119_vm6, %v890_v9, %v116_v33 }
  0xae   :  { %v125_v40 = vperm.slane %v120_v36, %v106_v18  ;;  %631 = vmatpush.bf16.msrb.mxu1 %v875_v23 }
  0xb0   :  { %v127_v42 = vmul.f32 %v125_v40, %v109_v37 }
  0xb2   :  { %v143_v44 = vmul.f32 %v141_v41, %v127_v42  ;;  %632 = vmatpush.bf16.msrb.mxu1 %v874_v24 }
  0xb4   :  { %v157_v45 = vadd.f32 %v155_v43, %v143_v44 }
  0xb6   :  { %159 = vst [vmem:[#allocation1] ss:$4 sm:$0xff] %v157_v45 }
  0xbd   :  { %v160_v46 = vld.sshfl [vmem:[#allocation1] sm:$0xff pattern:$0x73625140]  ;;  %v161_v47 = vld.sshfl [vmem:[#allocation1 + $0x8] sm:$0xff pattern:$0x73625140] }
  0xbe   :  { %v168_v48 = vpack.c.bf16 %v160_v46, %v160_v46  ;;  %v169_v49 = vpack.c.bf16 %v161_v47, %v161_v47  ;;  %v162_v50 = vld.sshfl [vmem:[#allocation1 + $0x10] sm:$0xff pattern:$0x73625140]  ;;  %v163_v51 = vld.sshfl [vmem:[#allocation1 + $0x18] sm:$0xff pattern:$0x73625140] }
  0xbf   :  { %v170_v52 = vpack.c.bf16 %v162_v50, %v162_v50  ;;  %v171_v53 = vpack.c.bf16 %v163_v51, %v163_v51 }
  0xc0   :  { %440 = vmatmul.bf16.vlgmr.msra.gmra.mxu0 %v168_v48  ;;  %453 = vmatmul.bf16.vlgmr.msra.gmra.mxu1 %v169_v49 }
  0xc1   :  { %466 = vmatmul.bf16.vlgmr.msra.gmra.mxu2 %v170_v52  ;;  %479 = vmatmul.bf16.vlgmr.msra.gmra.mxu3 %v171_v53 }
 0x13d   :  { %v441_v62 = vpop.f32.mrf.mxu0  ;;  %v454_v63 = vpop.f32.mrf.mxu1 }
 0x13e   :  { %v442_v1 = vadd.f32 %v884_v61, %v441_v62 }
 0x140   :  { %v455_v2 = vadd.f32 %v454_v63, %v442_v1 }
 0x144   :  { %v467_v3 = vpop.f32.mrf.mxu2  ;;  %v480_v4 = vpop.f32.mrf.mxu3 }
 0x145   :  { %v468_v5 = vadd.f32 %v467_v3, %v455_v2  ;;  %v443_v6 = vpop.f32.mrf.mxu0  ;;  %v456_v7 = vpop.f32.mrf.mxu1 }
 0x147   :  { %v481_v8 = vadd.f32 %v480_v4, %v468_v5 }
 0x149   :  { %v485_v9 = vmul.f32 %v481_v8, %v481_v8  ;;  %v484_v17 = vmul.f32 0.5, %v481_v8 }
 0x14b   :  { %v486_v10 = vmul.f32 %v485_v9, %v481_v8 }
 0x14c   :  { %v469_v11 = vpop.f32.mrf.mxu2  ;;  %v482_v12 = vpop.f32.mrf.mxu3 }
 0x14d   :  { %v487_v13 = vmul.f32 0.044715, %v486_v10 }
 0x14f   :  { %v488_v14 = vadd.f32 %v487_v13, %v481_v8 }
 0x151   :  { %v489_v15 = vmul.f32 0.7978846, %v488_v14 }
 0x153   :  { %891 = vtanh.f32 %v489_v15 }
 0x159   :  { %v892_v16 = vpop.eup %891 }
 0x15a   :  { %v491_v18 = vadd.f32 1.0, %v892_v16 }
 0x15c   :  { %v492_v19 = vmul.f32 %v491_v18, %v484_v17 }
 0x15e   :  { %v493_v20 = vpack.c.bf16 %v492_v19, %v492_v19 }
 0x160   :  { %570 = vmatmul.bf16.vlgmr.msrb.gmra.mxu0 %v493_v20 }
 0x1dd   :  { %v571_v26 = vpop.f32.mrf.mxu0 }
 0x1de   :  { %v572_v27 = vadd.f32 %v885_v25, %v571_v26 }
 0x1e0   :  { %v576_v28 = vmul.f32 %v572_v27, %v572_v27  ;;  %v575_v35 = vmul.f32 0.5, %v572_v27 }
 0x1e2   :  { %v577_v29 = vmul.f32 %v576_v28, %v572_v27 }
 0x1e4   :  { %v578_v30 = vmul.f32 0.044715, %v577_v29 }
 0x1e5   :  { %v573_v31 = vpop.f32.mrf.mxu0 }
 0x1e6   :  { %v579_v32 = vadd.f32 %v578_v30, %v572_v27 }
 0x1e8   :  { %v580_v33 = vmul.f32 0.7978846, %v579_v32 }
 0x1ea   :  { %893 = vtanh.f32 %v580_v33 }
 0x1f0   :  { %v894_v34 = vpop.eup %893 }
 0x1f1   :  { %v582_v36 = vadd.f32 1.0, %v894_v34 }
 0x1f3   :  { %v583_v37 = vmul.f32 %v582_v36, %v575_v35 }
 0x1f5   :  { %v584_v38 = vpack.c.bf16 %v583_v37, %v583_v37 }
 0x1f7   :  { %833 = vmatmul.msk.bf16.vlgmr.msrb.gmra.mxu1 %vm621_vm7, %v584_v38 }
 0x274   :  { %v634_v40 = vpop.f32.mrf.mxu1 }
 0x275   :  { %v635_v41 = vadd.f32 %v886_v39, %v634_v40 }
 0x277   :  { %639 = vst.msk [vmem:[#allocation5] sm:$0x3] %vm638_vm8, %v635_v41 }
 0x278   :  { %650 = dma.vmem_to_hbm [thread:$0]  %s646_s20, 32, %s648_s23, [#allocation4]  }
 0x27c   :  { %v636_v42 = vpop.f32.mrf.mxu1 }
 0x27d   :  { %945 = dma.done.wait [#allocation4], 32  }
 0x27e   :  { %946 = vsyncadd [#allocation4], 4294967264 }
 0x27f   :  { %655 = vsyncpa [#allocation3], 1 }
 0x280   :  { %656 = vsyncpa [#allocation4], 1 }

</bundles_post_ra>
